<compile_context>
chip_gen: v6e
topology: v6e:2x2x1
jax: 0.10.0
libtpu: 0.0.40
codegen_flags: <defaults>
</compile_context>

<pallas_src>
import functools

import jax
import jax.numpy as jnp
from jax.experimental import pallas as pl
from jax.experimental.pallas import tpu as pltpu


_LANE = 128
_MIB = 1024 * 1024
# XW stays VMEM-resident (double-buffered) while its footprint fits comfortably
# under v7x's 64 MiB per-TC VMEM; otherwise fall back to streaming it per k.
_RESIDENT_XW_LIMIT = 16 * _MIB


def _round_up(x, m):
    return ((x + m - 1) // m) * m


def _plan_tiles(n):
    """Pick (n_pad, tm, tk) with n_pad a multiple of both tm and tk.

    Big graphs: pad up to the row tile (512) so we never degrade to 128x128
    tiles; use the largest K tile (<=2048) that divides n_pad.
    Small graphs: minimal padding, keep >=2 row blocks when cheaply possible
    (v7x dual TensorCore).
    """
    n0 = _round_up(max(n, 1), _LANE)
    if n0 >= 1024:
        tm = 512
        n_pad = _round_up(n0, tm)
        tk = 512
        for t in (2048, 1024):
            if n_pad % t == 0:
                tk = t
                break
        return n_pad, tm, tk
    n_pad = n0
    half = n_pad // 2
    if half >= _LANE and half % _LANE == 0 and n_pad % half == 0:
        tm = half
    else:
        tm = _LANE if n_pad % _LANE == 0 else n_pad
    return n_pad, tm, n_pad


def _stage1_tile(n_pad):
    for t in (2048, 1024, 512, 256, 128):
        if t <= n_pad and n_pad % t == 0:
            return t
    return n_pad


def _vmem_limit_bytes(footprint):
    # Headroom above the actual footprint; never above 48 MiB so the scoped
    # limit stays safely under v7x's 64 MiB per-TC VMEM (v5e/v6e have 128 MiB).
    return int(min(48 * _MIB, max(32 * _MIB, footprint * 3 // 2)))


# ---------------------------------------------------------------------------
# Stage 1: XW = X @ W   (row-tiled over nodes; weight block is tiny & resident)
# ---------------------------------------------------------------------------
def _xw_kernel(x_ref, w_ref, o_ref):
    o_ref[...] = jnp.dot(
        x_ref[...].astype(jnp.bfloat16),
        w_ref[...],
        preferred_element_type=jnp.float32,
    ).astype(o_ref.dtype)


# ---------------------------------------------------------------------------
# Stage 2: H = act(A @ XW); accumulate into the resident output block.
# ---------------------------------------------------------------------------
def _a_xw_kernel(a_ref, xw_ref, o_ref, *, activation, valid_cols, tk,
                 xw_resident):
    k = pl.program_id(1)

    @pl.when(k == 0)
    def _():
        o_ref[...] = jnp.zeros_like(o_ref)

    if xw_resident:
        start = pl.multiple_of(k * tk, tk)
        xw_blk = xw_ref[pl.ds(start, tk), :]
    else:
        xw_blk = xw_ref[...]

    o_ref[...] += jnp.dot(a_ref[...], xw_blk, preferred_element_type=jnp.float32)

    @pl.when(k == pl.num_programs(1) - 1)
    def _():
        h = o_ref[...]  # f32 accumulator
        if activation == "relu":
            o_ref[...] = jnp.maximum(h, 0.0)
        elif activation == "softmax":
            # Per-row softmax over the *valid* feature columns only
            # (padded lanes are masked to -inf so they contribute 0).
            col = jax.lax.broadcasted_iota(jnp.int32, h.shape, dimension=1)
            h = jnp.where(col < valid_cols, h, -jnp.inf)
            m = jnp.max(h, axis=-1, keepdims=True)
            e = jnp.exp(h - m)
            denom = jnp.maximum(jnp.sum(e, axis=-1, keepdims=True), 1e-30)
            o_ref[...] = e * pl.reciprocal(denom, approx=True)
        # else: identity — accumulator already holds the result.


def gcn_layer(a_p, x_p, w_p, activation, valid_cols, *, n_pad, tm, tk):
    """One GCN layer on pre-padded inputs.

    a_p: (n_pad, n_pad)      bf16
    x_p: (n_pad, fin_pad)    f32 (or bf16) — padded rows/cols are exactly zero
    w_p: (fin_pad, fout_pad) bf16
    returns: (n_pad, fout_pad) f32 padded activation (zeros preserved by relu)
    """
    fin_pad = x_p.shape[1]
    fout_pad = w_p.shape[1]

    # --- Stage 1: XW, large independent row tile ----------------------------
    tm1 = _stage1_tile(n_pad)
    s1_footprint = 2 * (tm1 * fin_pad * x_p.dtype.itemsize) \
        + 2 * (fin_pad * fout_pad * 2) + 2 * (tm1 * fout_pad * 2)
    xw = pl.pallas_call(
        _xw_kernel,
        out_shape=jax.ShapeDtypeStruct((n_pad, fout_pad), jnp.bfloat16),
        grid_spec=pltpu.PrefetchScalarGridSpec(
            num_scalar_prefetch=0,
            grid=(n_pad // tm1,),
            in_specs=[
                pl.BlockSpec((tm1, fin_pad), lambda i: (i, 0)),
                pl.BlockSpec((fin_pad, fout_pad), lambda i: (0, 0)),
            ],
            out_specs=pl.BlockSpec((tm1, fout_pad), lambda i: (i, 0)),
        ),
        compiler_params=pltpu.CompilerParams(
            dimension_semantics=("parallel",),
            vmem_limit_bytes=_vmem_limit_bytes(s1_footprint),
        ),
    )(x_p, w_p)

    # --- Stage 2: act(A @ XW) ------------------------------------------------
    xw_bytes_resident = 2 * n_pad * fout_pad * 2  # double-buffered bf16
    xw_resident = xw_bytes_resident <= _RESIDENT_XW_LIMIT
    if xw_resident:
        xw_spec = pl.BlockSpec((n_pad, fout_pad), lambda i, k: (0, 0))
        xw_footprint = xw_bytes_resident
    else:
        xw_spec = pl.BlockSpec((tk, fout_pad), lambda i, k: (k, 0))
        xw_footprint = 2 * tk * fout_pad * 2

    footprint = 2 * (tm * tk * 2) + xw_footprint + 2 * (tm * fout_pad * 4)

    kernel = functools.partial(
        _a_xw_kernel,
        activation=activation,
        valid_cols=valid_cols,
        tk=tk,
        xw_resident=xw_resident,
    )
    out = pl.pallas_call(
        kernel,
        out_shape=jax.ShapeDtypeStruct((n_pad, fout_pad), jnp.float32),
        grid_spec=pltpu.PrefetchScalarGridSpec(
            num_scalar_prefetch=0,
            grid=(n_pad // tm, n_pad // tk),
            in_specs=[
                pl.BlockSpec((tm, tk), lambda i, k: (i, k)),
                xw_spec,
            ],
            out_specs=pl.BlockSpec((tm, fout_pad), lambda i, k: (i, 0)),
        ),
        compiler_params=pltpu.CompilerParams(
            dimension_semantics=("parallel", "arbitrary"),
            vmem_limit_bytes=_vmem_limit_bytes(footprint),
        ),
    )(a_p, xw)
    return out


def xavier_uniform(key, shape, dtype=jnp.float32):
    """Deterministic xavier_uniform like nn.init.xavier_uniform(weight)."""
    fan_in, fan_out = shape
    limit = jnp.sqrt(6.0 / (fan_in + fan_out))
    return jax.random.uniform(key, shape, dtype=dtype, minval=-limit, maxval=limit)


class GCNPallas:
    """JAX/Pallas re-implementation of the PyTorch GCN module's forward."""

    def __init__(self, input_dim, out_dim, hidden_dims=(10,), key=None):
        if key is None:
            key = jax.random.PRNGKey(0)
        self.dim_list = [input_dim] + list(hidden_dims) + [out_dim]
        self.num_layers = len(self.dim_list) - 1
        keys = jax.random.split(key, self.num_layers)
        self.weights = [
            xavier_uniform(keys[i], (self.dim_list[i], self.dim_list[i + 1]))
            for i in range(self.num_layers)
        ]
        # Pad + cast weights once (bf16 MXU inputs), lane-dense 128 widths.
        self.weights_padded = []
        for i in range(self.num_layers):
            f_in, f_out = self.dim_list[i], self.dim_list[i + 1]
            fin_pad = _round_up(f_in, _LANE)
            fout_pad = _round_up(f_out, _LANE)
            self.weights_padded.append(
                jnp.pad(
                    self.weights[i].astype(jnp.bfloat16),
                    ((0, fin_pad - f_in), (0, fout_pad - f_out)),
                )
            )
        self._a_cache = None  # (a_hat ref, n_pad, a_padded_bf16)

    def _prep_adjacency(self, a_hat, n_pad):
        if self._a_cache is not None:
            cached_a, cached_np, a_p = self._a_cache
            if cached_a is a_hat and cached_np == n_pad:
                return a_p
        n = a_hat.shape[0]
        a_p = jnp.pad(
            a_hat.astype(jnp.bfloat16), ((0, n_pad - n), (0, n_pad - n))
        )
        self._a_cache = (a_hat, n_pad, a_p)
        return a_p

    def __call__(self, a_hat, x):
        n = a_hat.shape[0]
        n_pad, tm, tk = _plan_tiles(n)
        a_p = self._prep_adjacency(a_hat, n_pad)

        f_in0 = self.dim_list[0]
        fin0_pad = _round_up(f_in0, _LANE)
        # Pad the input features once; hidden activations stay padded (their
        # padded rows/cols are exactly zero through relu) and are chained
        # directly between layers with no slice/cast/pad glue.
        h_pad = jnp.pad(
            x.astype(jnp.float32), ((0, n_pad - n), (0, fin0_pad - f_in0))
        )

        for ii in range(self.num_layers):
            act = "softmax" if ii == self.num_layers - 1 else "relu"
            h_pad = gcn_layer(
                a_p,
                h_pad,
                self.weights_padded[ii],
                act,
                self.dim_list[ii + 1],
                n_pad=n_pad,
                tm=tm,
                tk=tk,
            )
        return h_pad[:n, : self.dim_list[-1]]


def _ref_forward(a_hat, x, weights):
    h = x
    for ii, w in enumerate(weights):
        h = a_hat @ (h @ w)
        if ii == len(weights) - 1:
            h = jax.nn.softmax(h, axis=1)
        else:
            h = jax.nn.relu(h)
    return h


def _make_graph(key, n, input_dim):
    k_a, k_x = jax.random.split(key, 2)
    adj = jax.random.uniform(k_a, (n, n), dtype=jnp.float32)
    adj = 0.5 * (adj + adj.T) + jnp.eye(n, dtype=jnp.float32)
    deg = jnp.sum(adj, axis=1, keepdims=True)
    a_hat = adj / deg  # row-normalized
    x = jax.random.normal(k_x, (n, input_dim), dtype=jnp.float32)
    return a_hat, x


if __name__ == "__main__":
    key = jax.random.PRNGKey(0)
    k_g1, k_g2, k_g3, k_w = jax.random.split(key, 4)

    input_dim, out_dim = 8, 4
    hidden_dims = [10]
    model = GCNPallas(input_dim, out_dim, hidden_dims, key=k_w)

    # Test 1: tiny graph (N=16) -> single-tile grid.
    N1 = 16
    a1, x1 = _make_graph(k_g1, N1, input_dim)
    z1 = jax.block_until_ready(model(a1, x1))
    z1_ref = _ref_forward(a1, x1, model.weights)
    assert z1.shape == (N1, out_dim)
    assert jnp.allclose(jnp.sum(z1, axis=1), 1.0, atol=1e-2)
    assert jnp.allclose(z1, z1_ref, atol=3e-2, rtol=3e-2)

    # Test 2: N=300 -> padded to 384, multiple row blocks, single K step,
    # resident XW path.
    N2 = 300
    a2, x2 = _make_graph(k_g2, N2, input_dim)
    z2 = jax.block_until_ready(model(a2, x2))
    z2_ref = _ref_forward(a2, x2, model.weights)
    assert z2.shape == (N2, out_dim)
    assert jnp.allclose(jnp.sum(z2, axis=1), 1.0, atol=1e-2)
    assert jnp.allclose(z2, z2_ref, atol=3e-2, rtol=3e-2)

    # Test 3: N=1100 -> tile-aligned padding to 1536 (tm=512, tk=512), multiple
    # K steps exercising the in-place output accumulation.
    N3 = 1100
    a3, x3 = _make_graph(k_g3, N3, input_dim)
    z3 = jax.block_until_ready(model(a3, x3))
    z3_ref = _ref_forward(a3, x3, model.weights)
    assert z3.shape == (N3, out_dim)
    assert jnp.allclose(jnp.sum(z3, axis=1), 1.0, atol=1e-2)
    assert jnp.allclose(z3, z3_ref, atol=3e-2, rtol=3e-2)

    print("KERNEL_OK")
</pallas_src>

<mosaic_0001>
module attributes {stable_mosaic.version = 11 : i64} {
  func.func @_xw_kernel(%arg0: i32, %arg1: memref<128x128xf32, #tpu.memory_space<vmem>>, %arg2: memref<128x128xbf16, #tpu.memory_space<vmem>>, %arg3: memref<128x128xbf16, #tpu.memory_space<vmem>>) attributes {dimension_semantics = [#tpu.dimension_semantics<parallel>], iteration_bounds = array<i64: 1>, scalar_prefetch = 0 : i64, scratch_operands = 0 : i64, tpu.core_type = #tpu.core_type<tc>, window_params = [{transform_indices = @transform_0, window_bounds = array<i64: 128, 128>}, {pipeline_mode = #tpu.pipeline_mode<synchronous>, transform_indices = @transform_1, window_bounds = array<i64: 128, 128>}, {transform_indices = @transform_2, window_bounds = array<i64: 128, 128>}]} {
    %c0 = arith.constant 0 : index
    %c0_0 = arith.constant 0 : index
    %0 = vector.load %arg1[%c0, %c0_0] : memref<128x128xf32, #tpu.memory_space<vmem>>, vector<128x128xf32>
    %1 = arith.truncf %0 : vector<128x128xf32> to vector<128x128xbf16>
    %c0_1 = arith.constant 0 : index
    %c0_2 = arith.constant 0 : index
    %2 = vector.load %arg2[%c0_1, %c0_2] : memref<128x128xbf16, #tpu.memory_space<vmem>>, vector<128x128xbf16>
    %cst = arith.constant dense<0.000000e+00> : vector<128x128xf32>
    %3 = tpu.matmul %1, %2, %cst {dimension_numbers = #tpu.dot_dimension_numbers<[1], [0], [0], [1], [0, 0, 1, 1], [], []>} : vector<128x128xbf16>, vector<128x128xbf16>, vector<128x128xf32> -> vector<128x128xf32>
    %4 = arith.truncf %3 : vector<128x128xf32> to vector<128x128xbf16>
    %c0_3 = arith.constant 0 : index
    %c0_4 = arith.constant 0 : index
    %5 = vector.load %arg3[%c0_3, %c0_4] : memref<128x128xbf16, #tpu.memory_space<vmem>>, vector<128x128xbf16>
    tpu.vector_store %arg3[%c0_3, %c0_4], %4 {strides = array<i32>} : memref<128x128xbf16, #tpu.memory_space<vmem>>, vector<128x128xbf16>,
    return
  }
  func.func @transform_0(%arg0: i32) -> (i32, i32) {
    %c0_i32 = arith.constant 0 : i32
    %c0_i32_0 = arith.constant 0 : i32
    return %arg0, %c0_i32 : i32, i32
  }
  func.func @transform_1(%arg0: i32) -> (i32, i32) {
    %c0_i32 = arith.constant 0 : i32
    %c0_i32_0 = arith.constant 0 : i32
    %c0_i32_1 = arith.constant 0 : i32
    return %c0_i32, %c0_i32_0 : i32, i32
  }
  func.func @transform_2(%arg0: i32) -> (i32, i32) {
    %c0_i32 = arith.constant 0 : i32
    %c0_i32_0 = arith.constant 0 : i32
    return %arg0, %c0_i32 : i32, i32
  }
}

</mosaic_0001>

<bundles_post_ra>
// kernel: tpu_custom_call.1
= control target key start
LH: loop header
LB: loop body
LE: loop exit
PB: predicated region body
PF: predicated region fallthrough
CT: control target
= control target key end

     0   :  { %7 = vsyncpa [#allocation3], 0  ;;  %s593_s0 = inlined_call_operand.hbm [shape: f32[128,128], index: 0, kind: input, shape index: {}]   ;;  %s594_s1 = inlined_call_operand.hbm [shape: bf16[128,128], index: 1, kind: input, shape index: {}]   ;;  %s595_s2 = inlined_call_operand.hbm [shape: bf16[128,128], index: 2, kind: output, shape index: {}]  }
   0x1   :  { %8 = vsyncpa [#allocation6], 0 }
   0x2   :  { %9 = vsyncpa [#allocation4], 0  ;;  %s556_s9 = smov [#allocation2]  }
   0x3   :  { %s15_s10 = sshll.u32 %s556_s9, 4  ;;  %s16_s10 = int_to_ptr.vmem [resolvable:$true] %s15_s10 }
   0x4   :  { %s498_s11 = scalar_lea.vmem %s16_s10, 2048  ;;  %p503_p1 = scmp.lt.s32.totalorder %s16_s10, %s16_s10 }
   0x5   :  { %p499_p0 = scmp.ne.s32.totalorder %s16_s10, %s498_s11  ;;  %p504_p2 = scmp.lt.s32.totalorder %s498_s11, %s498_s11 }
   0x7   :  { %p505_p3 = por %p504_p2, %p503_p1 }
   0x9   :  { %p506_p4 = pnand %p505_p3, %p499_p0 }
   0xb   :  { %509 = shalt.err (!%p506_p4)
}
   0xc   :  { %s557_s12 = smov 128   ;;  %s558_s13 = smov 8  }
   0xd   :  { %21 = dma.hbm_to_vmem [thread:$0]  %s593_s0, 2048, %s16_s10, [#allocation3], %s557_s12, %s557_s12, %s558_s13  }
   0xe   :  { %s559_s16 = smov [#allocation5]  }
   0xf   :  { %s27_s17 = sshll.u32 %s559_s16, 4  ;;  %s28_s17 = int_to_ptr.vmem [resolvable:$true] %s27_s17 }
  0x10   :  { %s518_s18 = scalar_lea.vmem %s28_s17, 1024  ;;  %p523_p6 = scmp.lt.s32.totalorder %s28_s17, %s28_s17 }
  0x11   :  { %p519_p5 = scmp.ne.s32.totalorder %s28_s17, %s518_s18  ;;  %p524_p7 = scmp.lt.s32.totalorder %s518_s18, %s518_s18 }
  0x13   :  { %p525_p8 = por %p524_p7, %p523_p6 }
  0x15   :  { %p526_p9 = pnand %p525_p8, %p519_p5 }
  0x17   :  { %529 = shalt.err (!%p526_p9)
}
  0x18   :  { %s560_s19 = smov 64   ;;  %s561_s20 = smov 4  }
  0x19   :  { %33 = dma.hbm_to_vmem [thread:$0]  %s594_s1, 1024, %s28_s17, [#allocation6], %s560_s19, %s560_s19, %s561_s20  }
  0x1a   :  { %550 = dma.done.wait [#allocation3], 2048  }
  0x1b   :  { %551 = vsyncadd [#allocation3], 4294965248 }
  0x1c   :  { %552 = dma.done.wait [#allocation6], 1024  }
  0x1d   :  { %553 = vsyncadd [#allocation6], 4294966272  ;;  %v482_v0 = vld [vmem:[#allocation5 + $0x38] sm:$0xff]   ;;  %v483_v1 = vld [vmem:[#allocation5 + $0x30] sm:$0xff]   ;;  %s562_s0 = smov [#allocation7]  }
  0x1e   :  { %427 = vmatprep.subr.bf16.mxu0 %v482_v0  ;;  %459 = vmatprep.subr.bf16.mxu1 %v482_v0  ;;  %v484_v2 = vld [vmem:[#allocation5 + $0x28] sm:$0xff]   ;;  %v485_v3 = vld [vmem:[#allocation5 + $0x20] sm:$0xff]   ;;  %v486_v10 = vld [vmem:[#allocation5 + $0x18] sm:$0xff]   ;;  %s311_s1 = sshll.u32 %s562_s0, 4  ;;  %s312_s1 = int_to_ptr.vmem [resolvable:$true] %s311_s1 }
  0x1f   :  { %428 = vmatpush3.bf16.msra.mxu0 %v482_v0  ;;  %467 = vmatpush3.bf16.msra.mxu1 %v482_v0  ;;  %v41_v4 = vld [vmem:[#allocation2] sm:$0xff]  ;;  %v42_v5 = vld [vmem:[#allocation2 + $0x8] sm:$0xff]  ;;  %v487_v11 = vld [vmem:[#allocation5 + $0x10] sm:$0xff]   ;;  %s530_s23 = scalar_lea.vmem %s312_s1, 1024  ;;  %p535_p11 = scmp.lt.s32.totalorder %s312_s1, %s312_s1 }
  0x20   :  { %429 = vmatprep.subr.bf16.mxu0 %v483_v1  ;;  %460 = vmatprep.subr.bf16.mxu1 %v483_v1  ;;  %v49_v6 = vld [vmem:[#allocation2 + $0x40] sm:$0xff]  ;;  %v57_v7 = vpack.c.bf16 %v42_v5, %v41_v4  ;;  %v50_v8 = vld [vmem:[#allocation2 + $0x48] sm:$0xff]  ;;  %v43_v14 = vld [vmem:[#allocation2 + $0x10] sm:$0xff]  ;;  %p531_p10 = scmp.ne.s32.totalorder %s312_s1, %s530_s23  ;;  %p536_p12 = scmp.lt.s32.totalorder %s530_s23, %s530_s23 }
  0x21   :  { %v61_v9 = vpack.c.bf16 %v50_v8, %v49_v6  ;;  %v488_v12 = vld [vmem:[#allocation5 + $0x8] sm:$0xff]   ;;  %v489_v13 = vld [vmem:[#allocation5] sm:$0xff]   ;;  %v44_v15 = vld [vmem:[#allocation2 + $0x18] sm:$0xff] }
  0x22   :  { %443 = vmatprep.mubr.bf16.mxu0 %v57_v7  ;;  %v51_v16 = vld [vmem:[#allocation2 + $0x50] sm:$0xff]  ;;  %v52_v17 = vld [vmem:[#allocation2 + $0x58] sm:$0xff]  ;;  %v45_v18 = vld [vmem:[#allocation2 + $0x20] sm:$0xff]  ;;  %v58_v22 = vpack.c.bf16 %v44_v15, %v43_v14  ;;  %p537_p13 = por %p536_p12, %p535_p11 }
  0x23   :  { %430 = vmatpush3.bf16.msra.mxu0 %v483_v1  ;;  %468 = vmatpush3.bf16.msra.mxu1 %v483_v1  ;;  %v46_v19 = vld [vmem:[#allocation2 + $0x28] sm:$0xff]  ;;  %v53_v20 = vld [vmem:[#allocation2 + $0x60] sm:$0xff]  ;;  %v62_v23 = vpack.c.bf16 %v52_v17, %v51_v16  ;;  %v47_v26 = vld [vmem:[#allocation2 + $0x30] sm:$0xff] }
  0x24   :  { %431 = vmatprep.subr.bf16.mxu0 %v484_v2  ;;  %461 = vmatprep.subr.bf16.mxu1 %v484_v2  ;;  %v54_v21 = vld [vmem:[#allocation2 + $0x68] sm:$0xff]  ;;  %v59_v24 = vpack.c.bf16 %v46_v19, %v45_v18  ;;  %v48_v27 = vld [vmem:[#allocation2 + $0x38] sm:$0xff]  ;;  %v55_v28 = vld [vmem:[#allocation2 + $0x70] sm:$0xff]  ;;  %p538_p0 = pnand %p537_p13, %p531_p10 }
  0x25   :  { %451 = vmatprep.mubr.bf16.mxu1 %v61_v9  ;;  %v63_v25 = vpack.c.bf16 %v54_v21, %v53_v20  ;;  %v56_v29 = vld [vmem:[#allocation2 + $0x78] sm:$0xff]  ;;  %v60_v30 = vpack.c.bf16 %v48_v27, %v47_v26 }
  0x26   :  { %v64_v31 = vpack.c.bf16 %v56_v29, %v55_v28 }
  0x27   :  { %432 = vmatpush3.bf16.msra.mxu0 %v484_v2  ;;  %469 = vmatpush3.bf16.msra.mxu1 %v484_v2 }
  0x28   :  { %433 = vmatprep.subr.bf16.mxu0 %v485_v3  ;;  %462 = vmatprep.subr.bf16.mxu1 %v485_v3 }
  0x2b   :  { %434 = vmatpush3.bf16.msra.mxu0 %v485_v3  ;;  %470 = vmatpush3.bf16.msra.mxu1 %v485_v3 }
  0x2c   :  { %435 = vmatprep.subr.bf16.mxu0 %v486_v10  ;;  %463 = vmatprep.subr.bf16.mxu1 %v486_v10 }
  0x2f   :  { %436 = vmatpush3.bf16.msra.mxu0 %v486_v10  ;;  %471 = vmatpush3.bf16.msra.mxu1 %v486_v10 }
  0x30   :  { %437 = vmatprep.subr.bf16.mxu0 %v487_v11  ;;  %464 = vmatprep.subr.bf16.mxu1 %v487_v11 }
  0x33   :  { %438 = vmatpush3.bf16.msra.mxu0 %v487_v11  ;;  %472 = vmatpush3.bf16.msra.mxu1 %v487_v11 }
  0x34   :  { %439 = vmatprep.subr.bf16.mxu0 %v488_v12  ;;  %465 = vmatprep.subr.bf16.mxu1 %v488_v12 }
  0x37   :  { %440 = vmatpush3.bf16.msra.mxu0 %v488_v12  ;;  %473 = vmatpush3.bf16.msra.mxu1 %v488_v12 }
  0x38   :  { %441 = vmatprep.subr.bf16.mxu0 %v489_v13  ;;  %466 = vmatprep.subr.bf16.mxu1 %v489_v13 }
  0x3b   :  { %442 = vmatpush3.bf16.msra.mxu0 %v489_v13  ;;  %474 = vmatpush3.bf16.msra.mxu1 %v489_v13 }
  0x3e   :  { %444 = vmatmul.mubr.bf16.vlgmr.msra.gmra.mxu0 %v58_v22  ;;  %452 = vmatmul.mubr.bf16.vlgmr.msra.gmra.mxu1 %v62_v23 }
  0x3f   :  { %447 = vmatprep.mubr.bf16.mxu0 %v59_v24  ;;  %455 = vmatprep.mubr.bf16.mxu1 %v63_v25 }
  0x46   :  { %448 = vmatmul.mubr.bf16.gmra.mxu0 %v60_v30  ;;  %456 = vmatmul.mubr.bf16.gmra.mxu1 %v64_v31 }
  0xfe   :  { %v445_v32 = vpop.f32.mrf.mxu0  ;;  %v453_v33 = vpop.f32.mrf.mxu1 }
 0x100   :  { %v163_v34 = vpop.f32.mrf.mxu0  ;;  %v195_v35 = vpop.f32.mrf.mxu1 }
 0x102   :  { %v446_v36 = vpop.f32.mrf.mxu0  ;;  %v454_v37 = vpop.f32.mrf.mxu1 }
 0x103   :  { %v372_v38 = vpack.c.bf16 %v446_v36, %v445_v32  ;;  %v392_v39 = vpack.c.bf16 %v454_v37, %v453_v33 }
 0x104   :  { %v166_v40 = vpop.f32.mrf.mxu0  ;;  %v198_v41 = vpop.f32.mrf.mxu1 }
 0x105   :  { %404 = vst [vmem:[#allocation7 + $0x8] sm:$0xff] %v372_v38   ;;  %408 = vst [vmem:[#allocation7 + $0x28] sm:$0xff] %v392_v39   ;;  %v367_v42 = vpack.c.bf16 %v166_v40, %v163_v34  ;;  %v387_v43 = vpack.c.bf16 %v198_v41, %v195_v35 }
 0x106   :  { %v449_v44 = vpop.f32.mrf.mxu0  ;;  %v457_v45 = vpop.f32.mrf.mxu1 }
 0x107   :  { %368 = vst [vmem:[#allocation7] sm:$0xff] %v367_v42   ;;  %407 = vst [vmem:[#allocation7 + $0x20] sm:$0xff] %v387_v43  }
 0x108   :  { %v179_v46 = vpop.f32.mrf.mxu0  ;;  %v211_v47 = vpop.f32.mrf.mxu1 }
 0x10a   :  { %v450_v48 = vpop.f32.mrf.mxu0  ;;  %v458_v49 = vpop.f32.mrf.mxu1 }
 0x10b   :  { %v382_v50 = vpack.c.bf16 %v450_v48, %v449_v44  ;;  %v402_v51 = vpack.c.bf16 %v458_v49, %v457_v45 }
 0x10c   :  { %v182_v52 = vpop.f32.mrf.mxu0  ;;  %v214_v53 = vpop.f32.mrf.mxu1 }
 0x10d   :  { %406 = vst [vmem:[#allocation7 + $0x18] sm:$0xff] %v382_v50   ;;  %410 = vst [vmem:[#allocation7 + $0x38] sm:$0xff] %v402_v51   ;;  %v377_v54 = vpack.c.bf16 %v182_v52, %v179_v46  ;;  %v397_v55 = vpack.c.bf16 %v214_v53, %v211_v47 }
 0x10f   :  { %405 = vst [vmem:[#allocation7 + $0x10] sm:$0xff] %v377_v54   ;;  %409 = vst [vmem:[#allocation7 + $0x30] sm:$0xff] %v397_v55  }
 0x110   :  { %541 = shalt.err (!%p538_p0)
}
 0x111   :  { %317 = dma.vmem_to_hbm [thread:$0]  %s312_s1, 1024, %s595_s2, [#allocation4], %s560_s19, %s560_s19, %s561_s20  }
 0x112   :  { %554 = dma.done.wait [#allocation4], 1024  }
 0x113   :  { %555 = vsyncadd [#allocation4], 4294966272 }
 0x114   :  { %321 = vsyncpa [#allocation3], 1 }
 0x115   :  { %322 = vsyncpa [#allocation6], 1 }
 0x116   :  { %323 = vsyncpa [#allocation4], 1 }

</bundles_post_ra>
